<compile_context>
chip_gen: v7x
topology: tpu7x:2x2x1
jax: 0.10.0
libtpu: 0.0.40
codegen_flags: <defaults>
</compile_context>

<pallas_src>
import functools

import jax
import jax.numpy as jnp
from jax.experimental import pallas as pl
from jax.experimental.pallas import tpu as pltpu

_LANES = 128
_COMPUTE_DTYPE = jnp.bfloat16  # storage / MXU-feed dtype for weights & activations


def _round_up(x, m):
    return ((x + m - 1) // m) * m


def _mlp_kernel(x_ref, w1_ref, b1_ref, w2_ref, b2_ref, w3_ref, b3_ref, o_ref):
    # x_ref: (TB, state_size) bf16 ; w*: bf16 (128-lane padded) ; b*: (1, 128) f32
    # o_ref: (TB, 128) f32  -- lane-dense output slab
    x = x_ref[...]

    h1 = jnp.dot(x, w1_ref[...], preferred_element_type=jnp.float32) + b1_ref[...]
    h1 = jnp.maximum(h1, 0.0).astype(w2_ref.dtype)   # ReLU, back to bf16 for the MXU

    h2 = jnp.dot(h1, w2_ref[...], preferred_element_type=jnp.float32) + b2_ref[...]
    h2 = jnp.maximum(h2, 0.0).astype(w3_ref.dtype)   # ReLU

    out = jnp.dot(h2, w3_ref[...], preferred_element_type=jnp.float32) + b3_ref[...]
    o_ref[...] = out.astype(o_ref.dtype)             # full-vreg, unmasked store


@functools.partial(jax.jit, static_argnames=("block_batch",))
def network_forward(state, params, *, block_batch=512):
    """state: (B, state_size) f32; params: dict of w1,b1,w2,b2,w3,b3 (f32).

    Returns (B, action_size) f32 Q-values, matching the PyTorch module forward.
    """
    w1, b1 = params["w1"], params["b1"]
    w2, b2 = params["w2"], params["b2"]
    w3, b3 = params["w3"], params["b3"]

    batch, state_size = state.shape
    hidden = w1.shape[1]
    action_size = w3.shape[1]

    hp = _round_up(hidden, _LANES)        # 64  -> 128
    ap = _round_up(action_size, _LANES)   # 4   -> 128

    # Zero-pad feature dims to full 128-lane width; cast weights to bf16.
    w1p = jnp.zeros((state_size, hp), _COMPUTE_DTYPE).at[:, :hidden].set(w1.astype(_COMPUTE_DTYPE))
    w2p = jnp.zeros((hp, hp), _COMPUTE_DTYPE).at[:hidden, :hidden].set(w2.astype(_COMPUTE_DTYPE))
    w3p = jnp.zeros((hp, ap), _COMPUTE_DTYPE).at[:hidden, :action_size].set(w3.astype(_COMPUTE_DTYPE))
    b1p = jnp.zeros((1, hp), jnp.float32).at[:, :hidden].set(b1)
    b2p = jnp.zeros((1, hp), jnp.float32).at[:, :hidden].set(b2)
    b3p = jnp.zeros((1, ap), jnp.float32).at[:, :action_size].set(b3)

    # Batch tiling: large tiles amortize per-grid-step overhead; small batches use
    # one (8-row-aligned) tile.  Padded rows are zeros and are sliced off below.
    if batch <= block_batch:
        tb = _round_up(max(batch, 8), 8)
    else:
        tb = block_batch
    bp = _round_up(batch, tb)

    xs = state.astype(_COMPUTE_DTYPE)
    if bp != batch:
        xs = jnp.zeros((bp, state_size), _COMPUTE_DTYPE).at[:batch].set(xs)

    grid = (bp // tb,)
    resident = lambda i: (0, 0)   # same block every step => weights stay in VMEM

    out = pl.pallas_call(
        _mlp_kernel,
        out_shape=jax.ShapeDtypeStruct((bp, ap), jnp.float32),
        grid=grid,
        in_specs=[
            pl.BlockSpec((tb, state_size), lambda i: (i, 0)),   # streamed activations
            pl.BlockSpec((state_size, hp), resident),
            pl.BlockSpec((1, hp), resident),
            pl.BlockSpec((hp, hp), resident),
            pl.BlockSpec((1, hp), resident),
            pl.BlockSpec((hp, ap), resident),
            pl.BlockSpec((1, ap), resident),
        ],
        out_specs=pl.BlockSpec((tb, ap), lambda i: (i, 0)),
        compiler_params=pltpu.CompilerParams(
            dimension_semantics=("parallel",),   # shard batch tiles across TCs (v7x)
        ),
    )(xs, w1p, b1p, w2p, b2p, w3p, b3p)

    return out[:batch, :action_size]


def init_params(key, state_size, action_size, hidden=64):
    """Deterministic init mimicking PyTorch nn.Linear (uniform +-1/sqrt(fan_in))."""
    def linear(k, fan_in, fan_out):
        kw, kb = jax.random.split(k)
        bound = 1.0 / jnp.sqrt(jnp.float32(fan_in))
        w = jax.random.uniform(kw, (fan_in, fan_out), jnp.float32, -bound, bound)
        b = jax.random.uniform(kb, (1, fan_out), jnp.float32, -bound, bound)
        return w, b

    k1, k2, k3 = jax.random.split(key, 3)
    w1, b1 = linear(k1, state_size, hidden)
    w2, b2 = linear(k2, hidden, hidden)
    w3, b3 = linear(k3, hidden, action_size)
    return {"w1": w1, "b1": b1, "w2": w2, "b2": b2, "w3": w3, "b3": b3}


def _reference_forward(state, params):
    """Pure float32 reference (exact PyTorch-module semantics)."""
    h1 = jnp.maximum(state @ params["w1"] + params["b1"], 0.0)
    h2 = jnp.maximum(h1 @ params["w2"] + params["b2"], 0.0)
    return h2 @ params["w3"] + params["b3"]


def _reference_forward_bf16(state, params):
    """Reference applying the same bf16 operand storage the kernel uses."""
    c = lambda a: a.astype(jnp.bfloat16).astype(jnp.float32)
    h1 = jnp.maximum(c(state) @ c(params["w1"]) + params["b1"], 0.0)
    h2 = jnp.maximum(c(h1) @ c(params["w2"]) + params["b2"], 0.0)
    return c(h2) @ c(params["w3"]) + params["b3"]


if __name__ == "__main__":
    # LunarLander-v2: observation dim = 8, action dim = 4.
    state_size = 8
    action_size = 4

    key = jax.random.PRNGKey(0)
    k_params, k_small, k_large = jax.random.split(key, 3)
    params = init_params(k_params, state_size, action_size)

    # Small per-environment-step batch (acting path).
    state_small = jax.random.normal(k_small, (2, state_size), dtype=jnp.float32)
    q_small = jax.block_until_ready(network_forward(state_small, params))

    # Replay-minibatch-sized batch that exercises the tiled grid + padding path
    # (530 rows -> two 512-row grid steps).
    state_large = jax.random.normal(k_large, (530, state_size), dtype=jnp.float32)
    q_large = jax.block_until_ready(network_forward(state_large, params))

    assert q_small.shape == (2, action_size)
    assert q_large.shape == (530, action_size)

    # Tight check vs. a reference with identical bf16 operand rounding.
    assert jnp.allclose(q_small, _reference_forward_bf16(state_small, params), atol=1e-3, rtol=1e-3)
    assert jnp.allclose(q_large, _reference_forward_bf16(state_large, params), atol=1e-3, rtol=1e-3)
    # Loose check vs. the pure-f32 module semantics (bf16 storage error only).
    assert jnp.allclose(q_small, _reference_forward(state_small, params), atol=5e-2, rtol=5e-2)
    assert jnp.allclose(q_large, _reference_forward(state_large, params), atol=5e-2, rtol=5e-2)

    print("KERNEL_OK")
</pallas_src>

<mosaic_0001>
module attributes {stable_mosaic.version = 11 : i64} {
  func.func @_mlp_kernel(%arg0: i32, %arg1: memref<8x8xbf16, #tpu.memory_space<vmem>>, %arg2: memref<8x128xbf16, #tpu.memory_space<vmem>>, %arg3: memref<1x128xf32, #tpu.memory_space<vmem>>, %arg4: memref<128x128xbf16, #tpu.memory_space<vmem>>, %arg5: memref<1x128xf32, #tpu.memory_space<vmem>>, %arg6: memref<128x128xbf16, #tpu.memory_space<vmem>>, %arg7: memref<1x128xf32, #tpu.memory_space<vmem>>, %arg8: memref<8x128xf32, #tpu.memory_space<vmem>>) attributes {dimension_semantics = [#tpu.dimension_semantics<parallel>], iteration_bounds = array<i64: 1>, scalar_prefetch = 0 : i64, scratch_operands = 0 : i64, tpu.core_type = #tpu.core_type<tc>, window_params = [{transform_indices = @transform_0, window_bounds = array<i64: 8, 8>}, {pipeline_mode = #tpu.pipeline_mode<synchronous>, transform_indices = @transform_1, window_bounds = array<i64: 8, 128>}, {pipeline_mode = #tpu.pipeline_mode<synchronous>, transform_indices = @transform_2, window_bounds = array<i64: 1, 128>}, {pipeline_mode = #tpu.pipeline_mode<synchronous>, transform_indices = @transform_3, window_bounds = array<i64: 128, 128>}, {pipeline_mode = #tpu.pipeline_mode<synchronous>, transform_indices = @transform_4, window_bounds = array<i64: 1, 128>}, {pipeline_mode = #tpu.pipeline_mode<synchronous>, transform_indices = @transform_5, window_bounds = array<i64: 128, 128>}, {pipeline_mode = #tpu.pipeline_mode<synchronous>, transform_indices = @transform_6, window_bounds = array<i64: 1, 128>}, {transform_indices = @transform_7, window_bounds = array<i64: 8, 128>}]} {
    %c0 = arith.constant 0 : index
    %c0_0 = arith.constant 0 : index
    %0 = vector.load %arg1[%c0, %c0_0] : memref<8x8xbf16, #tpu.memory_space<vmem>>, vector<8x8xbf16>
    %c0_1 = arith.constant 0 : index
    %c0_2 = arith.constant 0 : index
    %1 = vector.load %arg2[%c0_1, %c0_2] : memref<8x128xbf16, #tpu.memory_space<vmem>>, vector<8x128xbf16>
    %cst = arith.constant dense<0.000000e+00> : vector<8x128xf32>
    %2 = tpu.matmul %0, %1, %cst {dimension_numbers = #tpu.dot_dimension_numbers<[1], [0], [0], [1], [0, 0, 1, 1], [], []>} : vector<8x8xbf16>, vector<8x128xbf16>, vector<8x128xf32> -> vector<8x128xf32>
    %c0_3 = arith.constant 0 : index
    %c0_4 = arith.constant 0 : index
    %3 = vector.load %arg3[%c0_3, %c0_4] : memref<1x128xf32, #tpu.memory_space<vmem>>, vector<1x128xf32>
    %4 = vector.broadcast %3 : vector<1x128xf32> to vector<8x128xf32>
    %5 = arith.addf %2, %4 : vector<8x128xf32>
    %cst_5 = arith.constant 0.000000e+00 : f32
    %6 = vector.broadcast %cst_5 : f32 to vector<8x128xf32>
    %7 = arith.maximumf %5, %6 : vector<8x128xf32>
    %8 = arith.truncf %7 : vector<8x128xf32> to vector<8x128xbf16>
    %c0_6 = arith.constant 0 : index
    %c0_7 = arith.constant 0 : index
    %9 = vector.load %arg4[%c0_6, %c0_7] : memref<128x128xbf16, #tpu.memory_space<vmem>>, vector<128x128xbf16>
    %cst_8 = arith.constant dense<0.000000e+00> : vector<8x128xf32>
    %10 = tpu.matmul %8, %9, %cst_8 {dimension_numbers = #tpu.dot_dimension_numbers<[1], [0], [0], [1], [0, 0, 1, 1], [], []>} : vector<8x128xbf16>, vector<128x128xbf16>, vector<8x128xf32> -> vector<8x128xf32>
    %c0_9 = arith.constant 0 : index
    %c0_10 = arith.constant 0 : index
    %11 = vector.load %arg5[%c0_9, %c0_10] : memref<1x128xf32, #tpu.memory_space<vmem>>, vector<1x128xf32>
    %12 = vector.broadcast %11 : vector<1x128xf32> to vector<8x128xf32>
    %13 = arith.addf %10, %12 : vector<8x128xf32>
    %cst_11 = arith.constant 0.000000e+00 : f32
    %14 = vector.broadcast %cst_11 : f32 to vector<8x128xf32>
    %15 = arith.maximumf %13, %14 : vector<8x128xf32>
    %16 = arith.truncf %15 : vector<8x128xf32> to vector<8x128xbf16>
    %c0_12 = arith.constant 0 : index
    %c0_13 = arith.constant 0 : index
    %17 = vector.load %arg6[%c0_12, %c0_13] : memref<128x128xbf16, #tpu.memory_space<vmem>>, vector<128x128xbf16>
    %cst_14 = arith.constant dense<0.000000e+00> : vector<8x128xf32>
    %18 = tpu.matmul %16, %17, %cst_14 {dimension_numbers = #tpu.dot_dimension_numbers<[1], [0], [0], [1], [0, 0, 1, 1], [], []>} : vector<8x128xbf16>, vector<128x128xbf16>, vector<8x128xf32> -> vector<8x128xf32>
    %c0_15 = arith.constant 0 : index
    %c0_16 = arith.constant 0 : index
    %19 = vector.load %arg7[%c0_15, %c0_16] : memref<1x128xf32, #tpu.memory_space<vmem>>, vector<1x128xf32>
    %20 = vector.broadcast %19 : vector<1x128xf32> to vector<8x128xf32>
    %21 = arith.addf %18, %20 : vector<8x128xf32>
    %c0_17 = arith.constant 0 : index
    %c0_18 = arith.constant 0 : index
    %22 = vector.load %arg8[%c0_17, %c0_18] : memref<8x128xf32, #tpu.memory_space<vmem>>, vector<8x128xf32>
    tpu.vector_store %arg8[%c0_17, %c0_18], %21 {strides = array<i32>} : memref<8x128xf32, #tpu.memory_space<vmem>>, vector<8x128xf32>,
    return
  }
  func.func @transform_0(%arg0: i32) -> (i32, i32) {
    %c0_i32 = arith.constant 0 : i32
    %c0_i32_0 = arith.constant 0 : i32
    return %arg0, %c0_i32 : i32, i32
  }
  func.func @transform_1(%arg0: i32) -> (i32, i32) {
    %c0_i32 = arith.constant 0 : i32
    %c0_i32_0 = arith.constant 0 : i32
    %c0_i32_1 = arith.constant 0 : i32
    return %c0_i32, %c0_i32_0 : i32, i32
  }
  func.func @transform_2(%arg0: i32) -> (i32, i32) {
    %c0_i32 = arith.constant 0 : i32
    %c0_i32_0 = arith.constant 0 : i32
    %c0_i32_1 = arith.constant 0 : i32
    return %c0_i32, %c0_i32_0 : i32, i32
  }
  func.func @transform_3(%arg0: i32) -> (i32, i32) {
    %c0_i32 = arith.constant 0 : i32
    %c0_i32_0 = arith.constant 0 : i32
    %c0_i32_1 = arith.constant 0 : i32
    return %c0_i32, %c0_i32_0 : i32, i32
  }
  func.func @transform_4(%arg0: i32) -> (i32, i32) {
    %c0_i32 = arith.constant 0 : i32
    %c0_i32_0 = arith.constant 0 : i32
    %c0_i32_1 = arith.constant 0 : i32
    return %c0_i32, %c0_i32_0 : i32, i32
  }
  func.func @transform_5(%arg0: i32) -> (i32, i32) {
    %c0_i32 = arith.constant 0 : i32
    %c0_i32_0 = arith.constant 0 : i32
    %c0_i32_1 = arith.constant 0 : i32
    return %c0_i32, %c0_i32_0 : i32, i32
  }
  func.func @transform_6(%arg0: i32) -> (i32, i32) {
    %c0_i32 = arith.constant 0 : i32
    %c0_i32_0 = arith.constant 0 : i32
    %c0_i32_1 = arith.constant 0 : i32
    return %c0_i32, %c0_i32_0 : i32, i32
  }
  func.func @transform_7(%arg0: i32) -> (i32, i32) {
    %c0_i32 = arith.constant 0 : i32
    %c0_i32_0 = arith.constant 0 : i32
    return %arg0, %c0_i32 : i32, i32
  }
}

</mosaic_0001>

<bundles_post_ra>
// kernel: network_forward.1
= control target key start
LH: loop header
LB: loop body
LE: loop exit
PB: predicated region body
PF: predicated region fallthrough
CT: control target
= control target key end

     0   :  { %vm40_vm0 = vcmask 1043456   ;;  %v419_v0 = vmov 0.0   ;;  %vm420_vm1 = vmmov 0   ;;  %vm36_vm2 = vcmask 64512   ;;  %s547_s1 = inlined_call_operand.vmem [shape: bf16[8,128], index: 1, kind: input, shape index: {}]   ;;  %s548_s0 = inlined_call_operand.vmem [shape: bf16[8,8], index: 0, kind: input, shape index: {}]   ;;  %s549_s3 = inlined_call_operand.vmem [shape: bf16[128,128], index: 3, kind: input, shape index: {}]   ;;  %s550_s5 = inlined_call_operand.vmem [shape: bf16[128,128], index: 5, kind: input, shape index: {}]   ;;  %s551_s2 = inlined_call_operand.vmem [shape: f32[1,128], index: 2, kind: input, shape index: {}]   ;;  %s552_s4 = inlined_call_operand.vmem [shape: f32[1,128], index: 4, kind: input, shape index: {}]   ;;  %s553_s6 = inlined_call_operand.vmem [shape: f32[1,128], index: 6, kind: input, shape index: {}]   ;;  %s554_s7 = inlined_call_operand.vmem [shape: f32[8,128], index: 7, kind: output, shape index: {}]  }
   0x1   :  { %355 = vmatprep.subr.bf16.mxu0 %v419_v0  ;;  %v28_v1 = vld [vmem:[%s547_s1] sm:$0xf]  ;;  %357 = vmatprep.mubr.msk.bf16.mxu0 %vm420_vm1, %v419_v0  ;;  %v404_v5 = vld [vmem:[%s549_s3 + $0x8] sm:$0xff]   ;;  %v405_v6 = vld [vmem:[%s549_s3 + $0x10] sm:$0xff]  }
   0x2   :  { %v42_v2 = vsel %vm40_vm0, %v28_v1, 0  ;;  %361 = vmatprep.subr.bf16.mxu1 %v419_v0  ;;  %v403_v3 = vld [vmem:[%s549_s3] sm:$0xff]   ;;  %377 = vmatprep.mubr.msk.bf16.mxu1 %vm420_vm1, %v419_v0  ;;  %v406_v7 = vld [vmem:[%s549_s3 + $0x18] sm:$0xff]   ;;  %v408_v9 = vld [vmem:[%s549_s3 + $0x28] sm:$0xff]  }
   0x3   :  { %356 = vmatpush3.bf16.msra.mxu0 %v42_v2  ;;  %v27_v4 = vld [vmem:[%s548_s0] sm:$0xf]  ;;  %362 = vmatpush3.bf16.msra.mxu1 %v403_v3  ;;  %v409_v10 = vld [vmem:[%s549_s3 + $0x30] sm:$0xff]   ;;  %v410_v11 = vld [vmem:[%s549_s3 + $0x38] sm:$0xff]  }
   0x4   :  { %381 = vmatprep.subr.bf16.mxu0 %v419_v0  ;;  %363 = vmatprep.subr.bf16.mxu1 %v419_v0  ;;  %v407_v8 = vld [vmem:[%s549_s3 + $0x20] sm:$0xff]   ;;  %v412_v13 = vld [vmem:[%s550_s5 + $0x8] sm:$0xff]   ;;  %v413_v14 = vld [vmem:[%s550_s5 + $0x10] sm:$0xff]  }
   0x5   :  { %v411_v12 = vld [vmem:[%s550_s5] sm:$0xff]   ;;  %v414_v15 = vld [vmem:[%s550_s5 + $0x18] sm:$0xff]   ;;  %v416_v17 = vld [vmem:[%s550_s5 + $0x28] sm:$0xff]  }
   0x6   :  { %358 = vmatmul.mubr.msk.bf16.vlgmr.msra.gmra.mrb[0].mxu0 %vm36_vm2, %v27_v4  ;;  %v415_v16 = vld [vmem:[%s550_s5 + $0x20] sm:$0xff]   ;;  %v417_v26 = vld [vmem:[%s550_s5 + $0x30] sm:$0xff]   ;;  %v418_v27 = vld [vmem:[%s550_s5 + $0x38] sm:$0xff]  }
   0x7   :  { %397 = vmatprep.mubr.msk.bf16.mxu0 %vm420_vm1, %v419_v0  ;;  %364 = vmatpush3.bf16.msra.mxu1 %v404_v5  ;;  %v315_v18 = vld [vmem:[%s551_s2] ss:$0 sm:$0xff] }
   0x8   :  { %365 = vmatprep.subr.bf16.mxu1 %v419_v0  ;;  %382 = vmatpush3.bf16.msra.mxu0 %v411_v12  ;;  %v317_v28 = vld [vmem:[%s552_s4] ss:$0 sm:$0xff] }
   0x9   :  { %383 = vmatprep.subr.bf16.mxu0 %v419_v0  ;;  %v326_v36 = vld [vmem:[%s553_s6] ss:$0 sm:$0xff] }
   0xb   :  { %366 = vmatpush3.bf16.msra.mxu1 %v405_v6 }
   0xc   :  { %367 = vmatprep.subr.bf16.mxu1 %v419_v0  ;;  %384 = vmatpush3.bf16.msra.mxu0 %v412_v13 }
   0xd   :  { %385 = vmatprep.subr.bf16.mxu0 %v419_v0 }
   0xf   :  { %368 = vmatpush3.bf16.msra.mxu1 %v406_v7 }
  0x10   :  { %369 = vmatprep.subr.bf16.mxu1 %v419_v0  ;;  %386 = vmatpush3.bf16.msra.mxu0 %v413_v14 }
  0x11   :  { %387 = vmatprep.subr.bf16.mxu0 %v419_v0 }
  0x13   :  { %370 = vmatpush3.bf16.msra.mxu1 %v407_v8 }
  0x14   :  { %371 = vmatprep.subr.bf16.mxu1 %v419_v0  ;;  %388 = vmatpush3.bf16.msra.mxu0 %v414_v15 }
  0x15   :  { %389 = vmatprep.subr.bf16.mxu0 %v419_v0 }
  0x17   :  { %372 = vmatpush3.bf16.msra.mxu1 %v408_v9 }
  0x18   :  { %373 = vmatprep.subr.bf16.mxu1 %v419_v0  ;;  %390 = vmatpush3.bf16.msra.mxu0 %v415_v16 }
  0x19   :  { %391 = vmatprep.subr.bf16.mxu0 %v419_v0 }
  0x1b   :  { %374 = vmatpush3.bf16.msra.mxu1 %v409_v10 }
  0x1c   :  { %375 = vmatprep.subr.bf16.mxu1 %v419_v0  ;;  %392 = vmatpush3.bf16.msra.mxu0 %v416_v17 }
  0x1d   :  { %393 = vmatprep.subr.bf16.mxu0 %v419_v0 }
  0x1f   :  { %376 = vmatpush3.bf16.msra.mxu1 %v410_v11 }
  0x20   :  { %394 = vmatpush3.bf16.msra.mxu0 %v417_v26 }
  0x21   :  { %395 = vmatprep.subr.bf16.mxu0 %v419_v0 }
  0x24   :  { %396 = vmatpush3.bf16.msra.mxu0 %v418_v27 }
  0xd9   :  { %v78_v19 = vpop.f32.mrb[0].mxu0 }
  0xda   :  { %v79_v20 = vadd.f32 %v315_v18, %v78_v19  ;;  %v359_v21 = vpop.f32.mrb[1].mxu0 }
  0xdb   :  { %v81_v22 = vpop.f32.mrb[2].mxu0 }
  0xdc   :  { %v84_v23 = vmax.f32 %v79_v20, 0.0  ;;  %v360_v24 = vpop.f32.mrb[3].mxu0 }
  0xde   :  { %v85_v25 = vpack.c.bf16 %v84_v23, %v84_v23 }
  0xe0   :  { %378 = vmatmul.mubr.bf16.vlgmr.msra.gmra.mrb[0].mxu1 %v85_v25 }
 0x1b3   :  { %v191_v29 = vpop.f32.mrb[0].mxu1 }
 0x1b4   :  { %v192_v30 = vadd.f32 %v317_v28, %v191_v29  ;;  %v379_v31 = vpop.f32.mrb[1].mxu1 }
 0x1b5   :  { %v194_v32 = vpop.f32.mrb[2].mxu1 }
 0x1b6   :  { %v197_v33 = vmax.f32 %v192_v30, 0.0  ;;  %v380_v34 = vpop.f32.mrb[3].mxu1 }
 0x1b8   :  { %v198_v35 = vpack.c.bf16 %v197_v33, %v197_v33 }
 0x1ba   :  { %398 = vmatmul.mubr.bf16.vlgmr.msra.gmra.mrb[4].mxu0 %v198_v35 }
 0x28d   :  { %v304_v37 = vpop.f32.mrb[4].mxu0 }
 0x28e   :  { %v305_v38 = vadd.f32 %v326_v36, %v304_v37  ;;  %v399_v39 = vpop.f32.mrb[5].mxu0 }
 0x28f   :  { %v307_v40 = vpop.f32.mrb[6].mxu0 }
 0x290   :  { %310 = vst [vmem:[%s554_s7] sm:$0xff] %v305_v38  ;;  %v400_v41 = vpop.f32.mrb[7].mxu0 }

</bundles_post_ra>
